<compile_context>
chip_gen: v6e
topology: v6e:2x2x1
jax: 0.10.0
libtpu: 0.0.40
codegen_flags: <defaults>
</compile_context>

<pallas_src>
import functools

import jax
import jax.numpy as jnp
from jax import lax
from jax.experimental import pallas as pl
from jax.experimental.pallas import tpu as pltpu


def _round_up(x, m):
    return ((x + m - 1) // m) * m


def _layernorm_kernel(x_ref, w_ref, b_ref, o_ref, *, eps, inv_d):
    # x_ref: (tm, Dp), w_ref/b_ref: (1, Dp), o_ref: (tm, Dp)
    # Padded lanes of x are zero, so they do not perturb s1/s2; inv_d = 1/D.
    x = x_ref[...].astype(jnp.float32)
    s1 = jnp.sum(x, axis=-1, keepdims=True)            # XLU reduce
    s2 = jnp.sum(x * x, axis=-1, keepdims=True)        # XLU reduce
    mean = s1 * inv_d
    var = jnp.maximum(s2 * inv_d - mean * mean, 0.0)   # guard tiny negatives
    inv = lax.rsqrt(var + eps)                          # EUP
    w = w_ref[...].astype(jnp.float32)
    b = b_ref[...].astype(jnp.float32)
    o_ref[...] = ((x - mean) * inv * w + b).astype(o_ref.dtype)


def _vmem_capacity_bytes():
    try:
        return int(pltpu.get_tpu_info().vmem_capacity_bytes)
    except Exception:
        return 64 << 20  # conservative (v7x per-TC VMEM)


def _sublane(itemsize):
    # Rows packed per vreg: 8 (f32), 16 (bf16/f16), 32 (int8/fp8).
    return max(8, 32 // max(itemsize, 1))


def _pick_tm(M, Dp, itemsize, vmem_limit_bytes):
    sub = _sublane(itemsize)
    # Double-buffered in tile + double-buffered out tile + ~2 full-tile f32
    # intermediates inside the kernel body.
    per_row = 2 * 2 * Dp * itemsize + 2 * Dp * 4
    budget = int(0.55 * vmem_limit_bytes)
    tm = budget // max(per_row, 1)
    tm = max(sub, min(1024, (tm // sub) * sub))
    # Keep >= ~4 grid steps when M allows so DMA / compute / store overlap.
    tm = min(tm, max(sub, _round_up(pl.cdiv(M, 4), sub)))
    # Never ask for more rows than exist (rounded to a sublane multiple).
    tm = min(tm, _round_up(M, sub))
    return tm


def _use_core_parallel():
    # v7x has 2 TensorCores per chip, each with its own HBM path: shard the
    # row-tile axis across them.  Single-TC chips use plain "parallel".
    try:
        if "v7" in jax.devices()[0].device_kind.lower():
            return True
    except Exception:
        pass
    try:
        info = pltpu.get_tpu_info()
        for attr in ("num_cores", "core_count", "num_tensorcores"):
            v = getattr(info, attr, None)
            if isinstance(v, int) and v > 1:
                return True
    except Exception:
        pass
    return False


def _layernorm_call(x2d, w2d, b2d, *, eps, inv_d, tm, vmem_limit, semantics):
    M, Dp = x2d.shape
    itemsize = jnp.dtype(x2d.dtype).itemsize
    cost = pl.CostEstimate(
        flops=8 * M * Dp,
        transcendentals=M,                               # one rsqrt per row
        bytes_accessed=2 * M * Dp * itemsize + 2 * Dp * itemsize,
    )
    kernel = functools.partial(_layernorm_kernel, eps=eps, inv_d=inv_d)
    return pl.pallas_call(
        kernel,
        out_shape=jax.ShapeDtypeStruct((M, Dp), x2d.dtype),
        grid_spec=pltpu.PrefetchScalarGridSpec(
            num_scalar_prefetch=0,
            grid=(pl.cdiv(M, tm),),
            in_specs=[
                pl.BlockSpec((tm, Dp), lambda i: (i, 0)),   # x row tile (full D)
                pl.BlockSpec((1, Dp), lambda i: (0, 0)),    # gamma (resident)
                pl.BlockSpec((1, Dp), lambda i: (0, 0)),    # beta  (resident)
            ],
            out_specs=pl.BlockSpec((tm, Dp), lambda i: (i, 0)),
        ),
        compiler_params=pltpu.CompilerParams(
            dimension_semantics=semantics,
            vmem_limit_bytes=vmem_limit,
        ),
        cost_estimate=cost,
    )(x2d, w2d, b2d)


def normalize(x, weight, bias, *, eps=1e-5, tm=None):
    """LayerNorm over the last dim (== deepspeed Normalize.forward)."""
    orig_shape = x.shape
    D = orig_shape[-1]
    assert weight.shape == (D,) and bias.shape == (D,)

    x2d = x.reshape(-1, D)
    M = x2d.shape[0]

    # Zero-pad the normalized axis to a multiple of 128 (lane-dense stores).
    Dp = _round_up(D, 128)
    if Dp != D:
        pad = Dp - D
        x2d = jnp.pad(x2d, ((0, 0), (0, pad)))
        w2d = jnp.pad(weight, (0, pad)).reshape(1, Dp)
        b2d = jnp.pad(bias, (0, pad)).reshape(1, Dp)
    else:
        w2d = weight.reshape(1, Dp)
        b2d = bias.reshape(1, Dp)

    itemsize = jnp.dtype(x.dtype).itemsize
    vmem_cap = _vmem_capacity_bytes()
    vmem_limit = int(max(16 << 20, min(64 << 20, vmem_cap // 2)))
    if tm is None:
        tm = _pick_tm(M, Dp, itemsize, vmem_limit)

    kwargs = dict(eps=float(eps), inv_d=1.0 / float(D),
                  tm=tm, vmem_limit=vmem_limit)

    if _use_core_parallel():
        try:
            out = _layernorm_call(x2d, w2d, b2d,
                                  semantics=(pltpu.CORE_PARALLEL,), **kwargs)
        except Exception:
            out = _layernorm_call(x2d, w2d, b2d,
                                  semantics=("parallel",), **kwargs)
    else:
        out = _layernorm_call(x2d, w2d, b2d, semantics=("parallel",), **kwargs)

    if Dp != D:
        out = out[:, :D]
    return out.reshape(orig_shape)


if __name__ == "__main__":
    # Shapes consistent with the module: input (batch, seq, hidden),
    # LayerNorm over hidden.
    batch, seq, hidden = 2, 8, 32
    eps = 1e-5
    dtype = jnp.float32

    key = jax.random.PRNGKey(0)
    kx, kw, kb = jax.random.split(key, 3)
    x = jax.random.normal(kx, (batch, seq, hidden), dtype=dtype)
    weight = 1.0 + 0.1 * jax.random.normal(kw, (hidden,), dtype=dtype)
    bias = 0.1 * jax.random.normal(kb, (hidden,), dtype=dtype)

    y = normalize(x, weight, bias, eps=eps)
    y = jax.block_until_ready(y)

    # Correctness check against plain JAX LayerNorm reference.
    mean = jnp.mean(x, axis=-1, keepdims=True)
    var = jnp.mean((x - mean) ** 2, axis=-1, keepdims=True)
    y_ref = (x - mean) / jnp.sqrt(var + eps) * weight + bias

    assert y.shape == (batch, seq, hidden)
    assert jnp.allclose(y, y_ref, atol=1e-4, rtol=1e-5), "mismatch vs reference"

    print("KERNEL_OK")
</pallas_src>

<mosaic_0001>
module attributes {stable_mosaic.version = 11 : i64} {
  func.func @_layernorm_kernel(%arg0: i32, %arg1: memref<8x128xf32, #tpu.memory_space<vmem>>, %arg2: memref<1x128xf32, #tpu.memory_space<vmem>>, %arg3: memref<1x128xf32, #tpu.memory_space<vmem>>, %arg4: memref<8x128xf32, #tpu.memory_space<vmem>>) attributes {dimension_semantics = [#tpu.dimension_semantics<parallel>], iteration_bounds = array<i64: 2>, scalar_prefetch = 0 : i64, scratch_operands = 0 : i64, tpu.core_type = #tpu.core_type<tc>, window_params = [{transform_indices = @transform_0, window_bounds = array<i64: 8, 128>}, {pipeline_mode = #tpu.pipeline_mode<synchronous>, transform_indices = @transform_1, window_bounds = array<i64: 1, 128>}, {pipeline_mode = #tpu.pipeline_mode<synchronous>, transform_indices = @transform_2, window_bounds = array<i64: 1, 128>}, {transform_indices = @transform_3, window_bounds = array<i64: 8, 128>}]} {
    %c0 = arith.constant 0 : index
    %c0_0 = arith.constant 0 : index
    %0 = vector.load %arg1[%c0, %c0_0] : memref<8x128xf32, #tpu.memory_space<vmem>>, vector<8x128xf32>
    %cst = arith.constant dense<0.000000e+00> : vector<8xf32>
    %1 = vector.multi_reduction <add>, %0, %cst [1] : vector<8x128xf32> to vector<8xf32>
    %2 = vector.shape_cast %1 : vector<8xf32> to vector<8x1xf32>
    %3 = arith.mulf %0, %0 : vector<8x128xf32>
    %cst_1 = arith.constant dense<0.000000e+00> : vector<8xf32>
    %4 = vector.multi_reduction <add>, %3, %cst_1 [1] : vector<8x128xf32> to vector<8xf32>
    %5 = vector.shape_cast %4 : vector<8xf32> to vector<8x1xf32>
    %cst_2 = arith.constant 3.125000e-02 : f32
    %6 = vector.broadcast %cst_2 : f32 to vector<8x1xf32>
    %7 = arith.mulf %2, %6 : vector<8x1xf32>
    %cst_3 = arith.constant 3.125000e-02 : f32
    %8 = vector.broadcast %cst_3 : f32 to vector<8x1xf32>
    %9 = arith.mulf %5, %8 : vector<8x1xf32>
    %10 = arith.mulf %7, %7 : vector<8x1xf32>
    %11 = arith.subf %9, %10 : vector<8x1xf32>
    %cst_4 = arith.constant 0.000000e+00 : f32
    %12 = vector.broadcast %cst_4 : f32 to vector<8x1xf32>
    %13 = arith.maximumf %11, %12 : vector<8x1xf32>
    %cst_5 = arith.constant 9.99999974E-6 : f32
    %14 = vector.broadcast %cst_5 : f32 to vector<8x1xf32>
    %15 = arith.addf %13, %14 : vector<8x1xf32>
    %16 = math.rsqrt %15 : vector<8x1xf32>
    %c0_6 = arith.constant 0 : index
    %c0_7 = arith.constant 0 : index
    %17 = vector.load %arg2[%c0_6, %c0_7] : memref<1x128xf32, #tpu.memory_space<vmem>>, vector<1x128xf32>
    %c0_8 = arith.constant 0 : index
    %c0_9 = arith.constant 0 : index
    %18 = vector.load %arg3[%c0_8, %c0_9] : memref<1x128xf32, #tpu.memory_space<vmem>>, vector<1x128xf32>
    %19 = vector.broadcast %7 : vector<8x1xf32> to vector<8x128xf32>
    %20 = arith.subf %0, %19 : vector<8x128xf32>
    %21 = vector.broadcast %16 : vector<8x1xf32> to vector<8x128xf32>
    %22 = arith.mulf %20, %21 : vector<8x128xf32>
    %23 = vector.broadcast %17 : vector<1x128xf32> to vector<8x128xf32>
    %24 = arith.mulf %22, %23 : vector<8x128xf32>
    %25 = vector.broadcast %18 : vector<1x128xf32> to vector<8x128xf32>
    %26 = arith.addf %24, %25 : vector<8x128xf32>
    %c0_10 = arith.constant 0 : index
    %c0_11 = arith.constant 0 : index
    %27 = vector.load %arg4[%c0_10, %c0_11] : memref<8x128xf32, #tpu.memory_space<vmem>>, vector<8x128xf32>
    tpu.vector_store %arg4[%c0_10, %c0_11], %26 {strides = array<i32>} : memref<8x128xf32, #tpu.memory_space<vmem>>, vector<8x128xf32>,
    return
  }
  func.func @transform_0(%arg0: i32) -> (i32, i32) {
    %c0_i32 = arith.constant 0 : i32
    %c0_i32_0 = arith.constant 0 : i32
    return %arg0, %c0_i32 : i32, i32
  }
  func.func @transform_1(%arg0: i32) -> (i32, i32) {
    %c0_i32 = arith.constant 0 : i32
    %c0_i32_0 = arith.constant 0 : i32
    %c0_i32_1 = arith.constant 0 : i32
    return %c0_i32, %c0_i32_0 : i32, i32
  }
  func.func @transform_2(%arg0: i32) -> (i32, i32) {
    %c0_i32 = arith.constant 0 : i32
    %c0_i32_0 = arith.constant 0 : i32
    %c0_i32_1 = arith.constant 0 : i32
    return %c0_i32, %c0_i32_0 : i32, i32
  }
  func.func @transform_3(%arg0: i32) -> (i32, i32) {
    %c0_i32 = arith.constant 0 : i32
    %c0_i32_0 = arith.constant 0 : i32
    return %arg0, %c0_i32 : i32, i32
  }
}

</mosaic_0001>

<bundles_post_ra>
// kernel: tpu_custom_call.1
= control target key start
LH: loop header
LB: loop body
LE: loop exit
PB: predicated region body
PF: predicated region fallthrough
CT: control target
= control target key end

     0   :  { %8 = vsyncpa [#allocation3], 0  ;;  %s627_s0 = inlined_call_operand.hbm [shape: f32[16,128], index: 0, kind: input, shape index: {}]   ;;  %s628_s1 = inlined_call_operand.vmem [shape: f32[1,128], index: 1, kind: input, shape index: {}]   ;;  %s629_s2 = inlined_call_operand.vmem [shape: f32[1,128], index: 2, kind: input, shape index: {}]   ;;  %s630_s3 = inlined_call_operand.hbm [shape: f32[16,128], index: 3, kind: output, shape index: {}]  }
   0x1   :  { %10 = vsyncpa [#allocation3 + $0x1], 0 }
   0x2   :  { %11 = vsyncpa [#allocation4], 0 }
   0x3   :  { %13 = vsyncpa [#allocation4 + $0x1], 0  ;;  %s480_s12 = smov 0   ;;  %s482_s13 = smov 0  }
   0x4   :  { %s484_s14 = smov 0   ;;  %s486_s15 = smov 0  }
   0x5 LB: > { %s501_s16 = sadd.s32 4294967295, %s456_s15   ;;  %s302_s17 = sadd.s32 4294967294, %s456_s15   ;;  %s456_s15 = sphi %s486_s15, %s647_s15   ;;  %s452_s14 = sphi %s484_s14, %s646_s14   ;;  %s448_s13 = sphi %s482_s13, %s645_s13   ;;  %s444_s12 = sphi %s480_s12, %s644_s12  }
   0x6   : > { %s505_s18 = sadd.s32 1, %s456_s15   ;;  %s26_s19 = sadd.s32 1, %s452_s14 }
   0x7   : > { %s23_s20 = ssub.s32 %s456_s15, %s505_s18  ;;  %p33_p0 = scmp.ne.s32.totalorder %s452_s14, %s448_s13 }
   0x8   : > { %p24_p1 = scmp.eq.s32.totalorder %s23_s20, 0  ;;  %p34_p2 = scmp.eq.s32.totalorder %s456_s15, 0 }
   0x9   : > { %p39_p3 = scmp.ne.s32.totalorder %s448_s13, %s444_s12  ;;  %p40_p4 = scmp.eq.s32.totalorder %s501_s16, 0 }
   0xa   : > { %s517_s21 = scalar_select %p24_p1, %s452_s14, %s26_s19  }
   0xb   : > { %p519_p5 = por %p34_p2, %p33_p0  ;;  %p523_p6 = por %p40_p4, %p39_p3 }
   0xc   : > { %p105_p7 = scmp.eq.s32.totalorder %s501_s16, 1  ;;  %p111_p8 = scmp.eq.s32.totalorder %s302_s17, 1 }
   0xd   : > { %s634_s23 = scalar_select %p523_p6, 1, 0 }
   0xe   : > { %p328_p10 = scmp.lt.s32.totalorder %s456_s15, 2  ;;  %p530_p11 = por %p105_p7, %p33_p0 }
   0xf   : > { %p534_p12 = por %p111_p8, %p39_p3  ;;  %s137_s26 = sand.u32 1, %s452_s14  }
  0x10   : > { %s635_s24 = scalar_select %p530_p11, 1, 0 }
  0x11   : > { %s636_s25 = scalar_select %p534_p12, 1, 0 }
  0x12   : > { %s306_s27 = sshll.u32 %s456_s15, 7  ;;  %s305_s28 = sshll.u32 %s137_s26, 3 }
  0x13   : > { %s543_s4 = scalar_lea.hbm %s627_s0, %s306_s27  ;;  %s141_s5 = scalar_lea.vmem [#allocation2], %s305_s28 }
  0x14   : > { %s148_s6 = sshll.u32 %s141_s5, 4  ;;  %p547_p13 = pnand %p328_p10, %p519_p5  ;;  %s551_s6 = int_to_ptr.vmem [resolvable:$true] %s148_s6 }
  0x15   : > { %s138_s8 = scalar_lea.sflag [#allocation3], %s137_s26  ;;  %s364_s9 = scalar_lea.hbm %s543_s4, 128 }
  0x16   : > { %p365_p2 = scmp.ne.s32.totalorder %s543_s4, %s364_s9  ;;  %p366_p3 = pneg %p547_p13 }
  0x17   : > { %s369_s17 = scalar_lea.hbm %s627_s0, 256  ;;  %p370_p5 = scmp.lt.s32.totalorder %s543_s4, %s627_s0 }
  0x18   : > { %p367_p4 = pnand %p366_p3, %p365_p2  ;;  %p371_p8 = scmp.lt.s32.totalorder %s369_s17, %s364_s9 }
  0x1a   : > { %p368_p7 = pneg %p367_p4  ;;  %p372_p10 = por %p371_p8, %p370_p5 }
  0x1c   : > { %p373_p9 = pnand %p372_p10, %p368_p7 }
  0x1e   : > { %376 = shalt.err (!%p373_p9)
}
  0x1f   : > { %s377_s22 = scalar_lea.vmem %s551_s6, 128  ;;  %s458_s26 = smov [#allocation2]  }
  0x20   : > { %p378_p0 = scmp.ne.s32.totalorder %s551_s6, %s377_s22  ;;  %s382_s27 = sshll.u32 %s458_s26, 4  ;;  %s383_s27 = int_to_ptr.vmem [resolvable:$false] %s382_s27 }
  0x21   : > { %s384_s28 = scalar_lea.vmem %s383_s27, 256  ;;  %p385_p4 = scmp.lt.s32.totalorder %s551_s6, %s383_s27 }
  0x22   : > { %p380_p1 = pnand %p378_p0, %p366_p3  ;;  %p386_p12 = scmp.lt.s32.totalorder %s384_s28, %s377_s22 }
  0x24   : > { %p381_p2 = pneg %p380_p1  ;;  %p387_p11 = por %p386_p12, %p385_p4 }
  0x26   : > { %p388_p6 = pnand %p387_p11, %p381_p2 }
  0x28   : > { %391 = shalt.err (!%p388_p6)
}
  0x29   : > { %323 = dma.hbm_to_vmem [thread:$0]  (!%p547_p13), %s543_s4, 128, %s551_s6, %s138_s8  }
  0x2a   : > { %p638_p9 = scmp.lt.s32.totalorder %s456_s15, 3  ;;  %p639_p7 = scmp.ge.s32.totalorder %s456_s15, 1 }
  0x2c   : > { %p154_p0 = pnand %p639_p7, %p638_p9 }
  0x2d   : > { %s578_s29 = sand.u32 (!%p154_p0), 1, %s448_s13   ;;  %p640_p6 = scmp.ne.s32.totalorder (!%p154_p0), %s634_s23, 0 }
  0x2e   : > { %157 = sbr.rel (%p154_p0) target bundleno = 236 (0xec), region = 32  ;;  %s308_s30 = sshll.u32 (!%p154_p0), %s578_s29, 3 }
  0x2f   : > { %s160_s5 = scalar_lea.sflag (!%p154_p0), [#allocation3], %s578_s29  ;;  %s163_s9 = scalar_lea.vmem (!%p154_p0), [#allocation2], %s308_s30 }
  0x33   : > { %435 = dma.done.wait (%p640_p6), %s160_s5, 128  }
  0x34   : > { %437 = vsyncadd (%p640_p6), %s160_s5, 4294967168  ;;  %v186_v0 = vld [vmem:[%s163_s9] sm:$0xff]  ;;  %s313_s8 = sshll.u32 %s501_s16, 7  ;;  %s185_s10 = scalar_lea.vmem [#allocation5], %s308_s30 }
  0x35   : > { %187 = vadd.xlane.f32.xlu0 %v186_v0  ;;  %v189_v1 = vmul.f32 %v186_v0, %v186_v0  ;;  %v310_v12 = vld [vmem:[%s628_s1] ss:$0 sm:$0xff]  ;;  %s232_s11 = sshll.u32 %s185_s10, 4  ;;  %s230_s20 = scalar_lea.hbm %s630_s3, %s313_s8  ;;  %s233_s11 = int_to_ptr.vmem [resolvable:$true] %s232_s11 }
  0x36   : > { %v311_v14 = vld [vmem:[%s629_s2] ss:$0 sm:$0xff]  ;;  %s219_s22 = scalar_lea.sflag [#allocation4], %s578_s29  ;;  %s392_s26 = scalar_lea.vmem %s233_s11, 128 }
  0x37   : > { %p393_p11 = scmp.ne.s32.totalorder %s233_s11, %s392_s26  ;;  %p641_p12 = scmp.ne.s32.totalorder %s635_s24, 0 }
  0x38   : > { %s459_s27 = smov [#allocation5]  }
  0x39   : > { %190 = vadd.xlane.f32.xlu0 %v189_v1  ;;  %p394_p13 = pnand %p393_p11, %p641_p12  ;;  %s396_s28 = sshll.u32 %s459_s27, 4  ;;  %s397_s28 = int_to_ptr.vmem [resolvable:$false] %s396_s28 }
  0x3a   : > { %s398_s16 = scalar_lea.vmem %s397_s28, 256  ;;  %p399_p3 = scmp.lt.s32.totalorder %s233_s11, %s397_s28 }
  0x3b   : > { %p395_p1 = pneg %p394_p13  ;;  %p400_p5 = scmp.lt.s32.totalorder %s398_s16, %s392_s26 }
  0x3d   : > { %p401_p8 = por %p400_p5, %p399_p3 }
  0x3f   : > { %p402_p10 = pnand %p401_p8, %p395_p1 }
  0xbe   : > { %v188_v2 = vpop.xlane.xlu0 %187 }
  0xbf   : > { %v192_v3 = vmul.f32 0.03125, %v188_v2 }
  0xc1   : > { %v194_v5 = vmul.f32 %v192_v3, %v192_v3  ;;  %v201_v10 = vsub.f32 %v186_v0, %v192_v3 }
  0xc2   : > { %v191_v4 = vpop.xlane.xlu0 %190 }
  0xc3   : > { %v193_v6 = vmul.f32 0.03125, %v191_v4 }
  0xc5   : > { %v195_v7 = vsub.f32 %v193_v6, %v194_v5 }
  0xc7   : > { %v196_v8 = vmax.f32 %v195_v7, 0.0 }
  0xc9   : > { %v197_v9 = vadd.f32 1e-05, %v196_v8 }
  0xcb   : > { %362 = vrsqrt.f32 %v197_v9 }
  0xd8   : > { %v363_v11 = vpop.eup %362 }
  0xd9   : > { %v202_v13 = vmul.f32 %v363_v11, %v201_v10 }
  0xdb   : > { %v209_v15 = vmul.f32 %v310_v12, %v202_v13 }
  0xdd   : > { %v216_v16 = vadd.f32 %v311_v14, %v209_v15 }
  0xdf   : > { %217 = vst [vmem:[%s185_s10] sm:$0xff] %v216_v16 }
  0xe0   : > { %405 = shalt.err (!%p402_p10)
}
  0xe1   : > { %s406_s30 = scalar_lea.hbm %s230_s20, 128  ;;  %s410_s9 = scalar_lea.hbm %s630_s3, 256 }
  0xe2   : > { %p407_p2 = scmp.ne.s32.totalorder %s230_s20, %s406_s30  ;;  %p411_p7 = scmp.lt.s32.totalorder %s230_s20, %s630_s3 }
  0xe3   : > { %p412_p0 = scmp.lt.s32.totalorder %s410_s9, %s406_s30 }
  0xe4   : > { %p408_p4 = pnand %p407_p2, %p641_p12 }
  0xe5   : > { %p413_p6 = por %p412_p0, %p411_p7 }
  0xe6   : > { %p409_p9 = pneg %p408_p4 }
  0xe8   : > { %p414_p11 = pnand %p413_p6, %p409_p9 }
  0xea   : > { %417 = shalt.err (!%p414_p11)
}
  0xeb   : > { %318 = dma.vmem_to_hbm [thread:$0]  (%p641_p12), %s233_s11, 128, %s230_s20, %s219_s22  }
  0xec PF: > { %s244_s6 = sand.u32 1, %s444_s12   ;;  %p642_p13 = scmp.ne.s32.totalorder %s636_s25, 0 }
  0xed   : > { %p643_p1 = scmp.ge.s32.totalorder %s456_s15, 2  ;;  %s245_s7 = scalar_lea.sflag [#allocation4], %s244_s6 }
  0xef   : > { %p325_p3 = pnand %p643_p1, %p642_p13 }
  0xf1   : > { %p326_p5 = pneg %p325_p3 }
  0xf3   : > { %439 = dma.done.wait (%p326_p5), %s245_s7, 128  }
  0xf4   : > { %441 = vsyncadd (%p326_p5), %s245_s7, 4294967168  ;;  %p16_p8 = scmp.ge.s32.totalorder %s505_s18, 4   ;;  %s644_s12 = smov %s448_s13 }
  0xf5   : > { %s645_s13 = smov %s452_s14  ;;  %s646_s14 = smov %s517_s21 }
  0xf6   : > { %s647_s15 = smov %s505_s18  ;;  %18 = sbr.rel (!%p16_p8) target bundleno = 5 (0x5), region = 77 }
  0xfb   :  { %250 = vsyncpa [#allocation3], 1 }
  0xfc   :  { %252 = vsyncpa [#allocation3 + $0x1], 1 }
  0xfd   :  { %253 = vsyncpa [#allocation4], 1 }
  0xfe   :  { %255 = vsyncpa [#allocation4 + $0x1], 1 }

</bundles_post_ra>
